<compile_context>
chip_gen: v7x
topology: tpu7x:2x2x1
jax: 0.10.0
libtpu: 0.0.40
codegen_flags: <defaults>
</compile_context>

<pallas_src>
import functools

import jax
import jax.numpy as jnp
from jax.experimental import pallas as pl
from jax.experimental.pallas import tpu as pltpu

_LANE = 128
_TARGET_STEP_BYTES = 8 << 20      # ~8 MiB of input (both operands) per grid step


def _dice_partial_kernel(x_ref, t_ref, out_ref, *, block_rows, ragged_rows):
    """One row-tile: per-lane partial sums of (sigmoid(x)*t, sigmoid(x), t)."""
    x = x_ref[...].astype(jnp.float32)     # narrow dtypes cast in-register
    t = t_ref[...].astype(jnp.float32)
    # sigmoid = 1 / (1 + exp(-x)); exp and the approximate reciprocal both land
    # on the EUP slot, keeping the VALU slots free for mul + reduction adds.
    s = pl.reciprocal(1.0 + jnp.exp(-x), approx=True)

    def _store(s_, t_):
        # Three direct row stores -- no stacked (3,128) intermediate relayout.
        out_ref[0, 0:1, :] = jnp.sum(s_ * t_, axis=0, keepdims=True)
        out_ref[0, 1:2, :] = jnp.sum(s_, axis=0, keepdims=True)
        out_ref[0, 2:3, :] = jnp.sum(t_, axis=0, keepdims=True)

    if ragged_rows:
        # Only the last grid step contains padded (garbage) rows; gate the mask
        # work so the common path's bundle count stays minimal.
        is_last = pl.program_id(0) == pl.num_programs(0) - 1

        @pl.when(jnp.logical_not(is_last))
        def _():
            _store(s, t)

        @pl.when(is_last)
        def _():
            row_ids = jax.lax.broadcasted_iota(jnp.int32, (block_rows, _LANE), 0)
            valid = row_ids < ragged_rows
            _store(jnp.where(valid, s, 0.0), jnp.where(valid, t, 0.0))
    else:
        _store(s, t)


def _choose_tile(rows, cap):
    """Pick a 32-aligned row tile; prefer >= 2 grid blocks for pipelining/megacore."""
    cap = min(cap, rows)
    if rows < 64:
        # Too small to split into two 32-aligned tiles: single full-extent block
        # (full extent is always a legal block shape).
        return rows, 1, 0
    if rows <= cap:
        # Fits in one step, but still split into (at least) two blocks so the
        # "parallel" axis can shard across v7x's two TensorCores and the
        # prologue DMA overlaps compute.
        br = ((-(-rows // 2) + 31) // 32) * 32
    else:
        br = max(32, (cap // 32) * 32)       # 32-aligned: legal for f32/bf16/int8
    num_blocks = -(-rows // br)
    ragged = rows - (num_blocks - 1) * br
    if ragged == br:
        ragged = 0                           # evenly divided -> no mask path
    return br, num_blocks, ragged


def dice_loss_pallas(output, target, smooth=1.0, eps=1e-7, block_rows=None):
    """Pallas TPU implementation of DiceLoss.forward(output, target)."""
    n = int(output.size)
    x_flat = jnp.reshape(output, (-1,))
    t_flat = jnp.reshape(target, (-1,))

    n_main = (n // _LANE) * _LANE
    rows = n_main // _LANE

    st = jnp.float32(0.0)
    ss = jnp.float32(0.0)
    tt = jnp.float32(0.0)

    if rows > 0:
        itemsize = x_flat.dtype.itemsize + t_flat.dtype.itemsize
        if block_rows is None:
            # dtype-scaled cap: ~8 MiB of input bytes per grid step.
            cap = _TARGET_STEP_BYTES // (_LANE * itemsize)
            cap = max(32, (cap // 32) * 32)
        else:
            cap = max(1, int(block_rows))
        br, num_blocks, ragged = _choose_tile(rows, cap)

        if n_main == n:
            x2 = jnp.reshape(x_flat, (rows, _LANE))
            t2 = jnp.reshape(t_flat, (rows, _LANE))
        else:
            x2 = jnp.reshape(x_flat[:n_main], (rows, _LANE))
            t2 = jnp.reshape(t_flat[:n_main], (rows, _LANE))

        kernel = functools.partial(
            _dice_partial_kernel, block_rows=br, ragged_rows=ragged)

        # Double-buffered inputs (2 bufs x 2 operands) + headroom; safe on all
        # generations (v5e/v6e 128 MiB physical, v7x 64 MiB physical).
        working = 2 * br * _LANE * itemsize
        vmem_limit = int(max(16 << 20, min(working + (4 << 20), 64 << 20)))

        partials = pl.pallas_call(
            kernel,
            out_shape=jax.ShapeDtypeStruct((num_blocks, 3, _LANE), jnp.float32),
            grid_spec=pltpu.PrefetchScalarGridSpec(
                num_scalar_prefetch=0,
                grid=(num_blocks,),
                in_specs=[
                    pl.BlockSpec((br, _LANE), lambda i: (i, 0)),
                    pl.BlockSpec((br, _LANE), lambda i: (i, 0)),
                ],
                out_specs=pl.BlockSpec((1, 3, _LANE), lambda i: (i, 0, 0)),
            ),
            compiler_params=pltpu.CompilerParams(
                dimension_semantics=("parallel",),     # megacore sharding on v7x
                vmem_limit_bytes=vmem_limit),
        )(x2, t2)

        sums = jnp.sum(partials, axis=(0, 2))           # (3,) tiny wrapper reduce
        st, ss, tt = sums[0], sums[1], sums[2]

    if n_main < n:
        # Ragged lane tail (< 128 elements): plain JAX, negligible cost.
        x_tail = x_flat[n_main:].astype(jnp.float32)
        t_tail = t_flat[n_main:].astype(jnp.float32)
        s_tail = jax.nn.sigmoid(x_tail)
        st = st + jnp.sum(s_tail * t_tail)
        ss = ss + jnp.sum(s_tail)
        tt = tt + jnp.sum(t_tail)

    # torch: if sum(target) == 0 -> output = 1 - output ; target = 1 - target
    # rewritten with the already-computed sums and N:
    #   sum((1-s)*(1-t)) = N - sum(s) - sum(t) + sum(s*t)
    #   sum(1-s)         = N - sum(s)
    #   sum(1-t)         = N - sum(t)
    n_f = jnp.float32(n)
    flip = tt == jnp.float32(0.0)
    st_f = jnp.where(flip, n_f - ss - tt + st, st)
    ss_f = jnp.where(flip, n_f - ss, ss)
    tt_f = jnp.where(flip, n_f - tt, tt)
    return 1.0 - (2.0 * st_f + smooth) / (ss_f + tt_f + smooth + eps)


def dice_loss_ref(output, target, smooth=1.0, eps=1e-7):
    """Pure-JAX reference mirroring the PyTorch forward."""
    s = jax.nn.sigmoid(output.astype(jnp.float32))
    t = target.astype(jnp.float32)
    flip = jnp.sum(t) == 0.0
    s = jnp.where(flip, 1.0 - s, s)
    t = jnp.where(flip, 1.0 - t, t)
    return 1.0 - (2.0 * jnp.sum(s * t) + smooth) / (jnp.sum(s) + jnp.sum(t) + smooth + eps)


if __name__ == "__main__":
    key = jax.random.PRNGKey(0)
    keys = jax.random.split(key, 8)
    # Tolerance accounts for the approximate EUP reciprocal in the in-kernel
    # sigmoid and for the different summation order (loss is O(1) in magnitude).
    TOL = dict(atol=5e-3, rtol=5e-3)

    # --- test 1: normal path, lane-aligned shape --------------------------
    B, C, H, W = 2, 4, 16, 16
    logits = jax.random.normal(keys[0], (B, C, H, W), dtype=jnp.float32)
    target = (jax.random.uniform(keys[1], (B, C, H, W)) > 0.5).astype(jnp.float32)
    loss = jax.block_until_ready(dice_loss_pallas(logits, target))
    ref = dice_loss_ref(logits, target)
    assert jnp.allclose(loss, ref, **TOL), (loss, ref)

    # --- test 2: all-zero-target flip branch -------------------------------
    zeros = jnp.zeros((B, C, H, W), jnp.float32)
    loss0 = jax.block_until_ready(dice_loss_pallas(logits, zeros))
    ref0 = dice_loss_ref(logits, zeros)
    assert jnp.allclose(loss0, ref0, **TOL), (loss0, ref0)

    # --- test 3: ragged rows + lane tail (multi-block, pl.when mask path) --
    shp = (2, 3, 40, 37)                              # 8880 elems: 69 rows + tail of 48
    logits_r = jax.random.normal(keys[2], shp, dtype=jnp.float32)
    target_r = (jax.random.uniform(keys[3], shp) > 0.5).astype(jnp.float32)
    loss_r = jax.block_until_ready(dice_loss_pallas(logits_r, target_r))
    ref_r = dice_loss_ref(logits_r, target_r)
    assert jnp.allclose(loss_r, ref_r, **TOL), (loss_r, ref_r)

    # --- test 4: native bf16 logits (no wrapper upcast) --------------------
    logits_bf = jax.random.normal(keys[4], (B, C, H, W), dtype=jnp.bfloat16)
    target_bf = (jax.random.uniform(keys[5], (B, C, H, W)) > 0.5).astype(jnp.float32)
    loss_bf = jax.block_until_ready(dice_loss_pallas(logits_bf, target_bf))
    ref_bf = dice_loss_ref(logits_bf, target_bf)
    assert jnp.allclose(loss_bf, ref_bf, **TOL), (loss_bf, ref_bf)

    # --- test 5: caller-forced small tile (multi-block, even divide) -------
    shp2 = (4, 4, 32, 32)                             # 16384 elems: 128 rows
    logits_s = jax.random.normal(keys[6], shp2, dtype=jnp.float32)
    target_s = (jax.random.uniform(keys[7], shp2) > 0.5).astype(jnp.float32)
    loss_s = jax.block_until_ready(dice_loss_pallas(logits_s, target_s, block_rows=32))
    ref_s = dice_loss_ref(logits_s, target_s)
    assert jnp.allclose(loss_s, ref_s, **TOL), (loss_s, ref_s)

    print("KERNEL_OK")
</pallas_src>

<mosaic_0001>
module attributes {stable_mosaic.version = 11 : i64} {
  func.func @_dice_partial_kernel(%arg0: i32, %arg1: memref<16x128xf32, #tpu.memory_space<vmem>>, %arg2: memref<16x128xf32, #tpu.memory_space<vmem>>, %arg3: memref<1x3x128xf32, #tpu.memory_space<vmem>>) attributes {dimension_semantics = [#tpu.dimension_semantics<parallel>], iteration_bounds = array<i64: 1>, scalar_prefetch = 0 : i64, scratch_operands = 0 : i64, tpu.core_type = #tpu.core_type<tc>, window_params = [{transform_indices = @transform_0, window_bounds = array<i64: 16, 128>}, {transform_indices = @transform_1, window_bounds = array<i64: 16, 128>}, {transform_indices = @transform_2, window_bounds = array<i64: 1, 3, 128>}]} {
    %c0 = arith.constant 0 : index
    %c0_0 = arith.constant 0 : index
    %0 = vector.load %arg1[%c0, %c0_0] : memref<16x128xf32, #tpu.memory_space<vmem>>, vector<16x128xf32>
    %c0_1 = arith.constant 0 : index
    %c0_2 = arith.constant 0 : index
    %1 = vector.load %arg2[%c0_1, %c0_2] : memref<16x128xf32, #tpu.memory_space<vmem>>, vector<16x128xf32>
    %cst = arith.constant 0.000000e+00 : f32
    %2 = vector.broadcast %cst : f32 to vector<16x128xf32>
    %3 = arith.subf %2, %0 : vector<16x128xf32>
    %4 = math.exp %3 : vector<16x128xf32>
    %cst_3 = arith.constant 1.000000e+00 : f32
    %5 = vector.broadcast %cst_3 : f32 to vector<16x128xf32>
    %6 = arith.addf %5, %4 : vector<16x128xf32>
    %7 = tpu.reciprocal %6 {approx = true} : vector<16x128xf32> -> vector<16x128xf32>
    %8 = arith.mulf %7, %1 : vector<16x128xf32>
    %cst_4 = arith.constant dense<0.000000e+00> : vector<128xf32>
    %9 = vector.multi_reduction <add>, %8, %cst_4 [0] : vector<16x128xf32> to vector<128xf32>
    %10 = vector.shape_cast %9 : vector<128xf32> to vector<1x128xf32>
    %c0_5 = arith.constant 0 : index
    %c0_6 = arith.constant 0 : index
    %c0_7 = arith.constant 0 : index
    %11 = vector.load %arg3[%c0_5, %c0_6, %c0_7] : memref<1x3x128xf32, #tpu.memory_space<vmem>>, vector<1x1x128xf32>
    %12 = vector.shape_cast %11 : vector<1x1x128xf32> to vector<1x128xf32>
    %13 = vector.shape_cast %10 : vector<1x128xf32> to vector<1x1x128xf32>
    tpu.vector_store %arg3[%c0_5, %c0_6, %c0_7], %13 {strides = array<i32>} : memref<1x3x128xf32, #tpu.memory_space<vmem>>, vector<1x1x128xf32>,
    %cst_8 = arith.constant dense<0.000000e+00> : vector<128xf32>
    %14 = vector.multi_reduction <add>, %7, %cst_8 [0] : vector<16x128xf32> to vector<128xf32>
    %15 = vector.shape_cast %14 : vector<128xf32> to vector<1x128xf32>
    %c0_9 = arith.constant 0 : index
    %c1 = arith.constant 1 : index
    %c0_10 = arith.constant 0 : index
    %16 = vector.load %arg3[%c0_9, %c1, %c0_10] : memref<1x3x128xf32, #tpu.memory_space<vmem>>, vector<1x1x128xf32>
    %17 = vector.shape_cast %16 : vector<1x1x128xf32> to vector<1x128xf32>
    %18 = vector.shape_cast %15 : vector<1x128xf32> to vector<1x1x128xf32>
    tpu.vector_store %arg3[%c0_9, %c1, %c0_10], %18 {strides = array<i32>} : memref<1x3x128xf32, #tpu.memory_space<vmem>>, vector<1x1x128xf32>,
    %cst_11 = arith.constant dense<0.000000e+00> : vector<128xf32>
    %19 = vector.multi_reduction <add>, %1, %cst_11 [0] : vector<16x128xf32> to vector<128xf32>
    %20 = vector.shape_cast %19 : vector<128xf32> to vector<1x128xf32>
    %c0_12 = arith.constant 0 : index
    %c2 = arith.constant 2 : index
    %c0_13 = arith.constant 0 : index
    %21 = vector.load %arg3[%c0_12, %c2, %c0_13] : memref<1x3x128xf32, #tpu.memory_space<vmem>>, vector<1x1x128xf32>
    %22 = vector.shape_cast %21 : vector<1x1x128xf32> to vector<1x128xf32>
    %23 = vector.shape_cast %20 : vector<1x128xf32> to vector<1x1x128xf32>
    tpu.vector_store %arg3[%c0_12, %c2, %c0_13], %23 {strides = array<i32>} : memref<1x3x128xf32, #tpu.memory_space<vmem>>, vector<1x1x128xf32>,
    return
  }
  func.func @transform_0(%arg0: i32) -> (i32, i32) {
    %c0_i32 = arith.constant 0 : i32
    %c0_i32_0 = arith.constant 0 : i32
    return %arg0, %c0_i32 : i32, i32
  }
  func.func @transform_1(%arg0: i32) -> (i32, i32) {
    %c0_i32 = arith.constant 0 : i32
    %c0_i32_0 = arith.constant 0 : i32
    return %arg0, %c0_i32 : i32, i32
  }
  func.func @transform_2(%arg0: i32) -> (i32, i32, i32) {
    %c0_i32 = arith.constant 0 : i32
    %c0_i32_0 = arith.constant 0 : i32
    %c0_i32_1 = arith.constant 0 : i32
    return %arg0, %c0_i32, %c0_i32_0 : i32, i32, i32
  }
}

</mosaic_0001>

<bundles_post_ra>
// kernel: tpu_custom_call.1
= control target key start
LH: loop header
LB: loop body
LE: loop exit
PB: predicated region body
PF: predicated region fallthrough
CT: control target
= control target key end

     0   :  { %7 = vsyncpa [#allocation3], 0  ;;  %s197_s0 = inlined_call_operand.hbm [shape: f32[16,128], index: 0, kind: input, shape index: {}]   ;;  %s198_s1 = inlined_call_operand.hbm [shape: f32[16,128], index: 1, kind: input, shape index: {}]   ;;  %s199_s2 = inlined_call_operand.vmem [shape: f32[1,3,128], index: 2, kind: output, shape index: {}]  }
   0x1   :  { %8 = vsyncpa [#allocation5], 0  ;;  %s145_s9 = smov [#allocation2]   ;;  %s97_s13 = scalar_lea.hbm %s197_s0, 256 }
   0x2   :  { %s14_s10 = sshll.u32 %s145_s9, 4  ;;  %p98_p0 = scmp.ne.s32.totalorder %s197_s0, %s97_s13  ;;  %s15_s10 = int_to_ptr.vmem [resolvable:$true] %s14_s10 }
   0x3   :  { %p101_p1 = scmp.lt.u32.totalorder %s97_s13, %s197_s0 }
   0x5   :  { %p103_p2 = pnand %p101_p1, %p98_p0 }
   0x7   :  { %106 = shalt.err (!%p103_p2)
}
   0x8   :  { %s107_s18 = scalar_lea.vmem %s15_s10, 256  ;;  %p112_p4 = scmp.lt.s32.totalorder %s15_s10, %s15_s10 }
   0x9   :  { %p108_p3 = scmp.ne.s32.totalorder %s15_s10, %s107_s18  ;;  %p113_p5 = scmp.lt.s32.totalorder %s107_s18, %s107_s18 }
   0xb   :  { %p114_p6 = por %p113_p5, %p112_p4 }
   0xd   :  { %p115_p7 = pnand %p114_p6, %p108_p3 }
   0xf   :  { %118 = shalt.err (!%p115_p7)
}
  0x10   :  { %s146_s19 = smov 128   ;;  %s147_s20 = smov 8  }
  0x11   :  { %20 = dma.hbm_to_vmem [thread:$0]  %s197_s0, 256, %s15_s10, [#allocation3], %s146_s19, %s146_s19, %s147_s20  }
  0x12   :  { %s148_s23 = smov [#allocation4]   ;;  %s119_s27 = scalar_lea.hbm %s198_s1, 256 }
  0x13   :  { %s26_s24 = sshll.u32 %s148_s23, 4  ;;  %p120_p8 = scmp.ne.s32.totalorder %s198_s1, %s119_s27  ;;  %s27_s24 = int_to_ptr.vmem [resolvable:$true] %s26_s24 }
  0x14   :  { %p123_p9 = scmp.lt.u32.totalorder %s119_s27, %s198_s1 }
  0x16   :  { %p125_p10 = pnand %p123_p9, %p120_p8 }
  0x18   :  { %128 = shalt.err (!%p125_p10)
}
  0x19   :  { %s129_s4 = scalar_lea.vmem %s27_s24, 256  ;;  %p134_p12 = scmp.lt.s32.totalorder %s27_s24, %s27_s24 }
  0x1a   :  { %p130_p11 = scmp.ne.s32.totalorder %s27_s24, %s129_s4  ;;  %p135_p13 = scmp.lt.s32.totalorder %s129_s4, %s129_s4 }
  0x1c   :  { %p136_p0 = por %p135_p13, %p134_p12 }
  0x1e   :  { %p137_p1 = pnand %p136_p0, %p130_p11 }
  0x20   :  { %140 = shalt.err (!%p137_p1)
}
  0x21   :  { %32 = dma.hbm_to_vmem [thread:$0]  %s198_s1, 256, %s27_s24, [#allocation5], %s146_s19, %s146_s19, %s147_s20  }
  0x22   :  { %141 = dma.done.wait [#allocation3], 256  }
  0x23   :  { %142 = vsyncadd [#allocation3], 4294967040 }
  0x24   :  { %143 = dma.done.wait [#allocation5], 256  }
  0x25   :  { %144 = vsyncadd [#allocation5], 4294967040  ;;  %v39_v0 = vld [vmem:[#allocation2] sm:$0xff]  ;;  %v40_v1 = vld [vmem:[#allocation2 + $0x8] sm:$0xff] }
  0x26   :  { %v41_v2 = vld [vmem:[#allocation4] sm:$0xff]  ;;  %v42_v3 = vld [vmem:[#allocation4 + $0x8] sm:$0xff]  ;;  %v43_v4 = vsub.f32 0.0, %v39_v0  ;;  %v44_v5 = vsub.f32 0.0, %v40_v1 }
  0x27   :  { %v71_v6 = vadd.f32 %v42_v3, %v41_v2 }
  0x28   :  { %v45_v7 = vmul.f32 1.442695, %v43_v4  ;;  %v47_v8 = vmul.f32 1.442695, %v44_v5 }
  0x29   :  { %v72_v9 = vrot.slane %v71_v6, 4 }
  0x2a   :  { %89 = vpow2.f32 %v45_v7 }
  0x2b   :  { %91 = vpow2.f32 %v47_v8  ;;  %v73_v10 = vadd.f32 %v72_v9, %v71_v6 }
  0x2d   :  { %v74_v11 = vrot.slane %v73_v10, 2 }
  0x2f   :  { %v75_v12 = vadd.f32 %v74_v11, %v73_v10 }
  0x31   :  { %v76_v13 = vrot.slane %v75_v12, 1 }
  0x33   :  { %v77_v14 = vadd.f32 %v76_v13, %v75_v12 }
  0x34   :  { %v90_v15 = vpop.eup %89 }
  0x35   :  { %v92_v16 = vpop.eup %91  ;;  %v49_v17 = vadd.f32 1.0, %v90_v15  ;;  %78 = vst [vmem:[%s199_s2 + $0x2] sm:$0x1] %v77_v14 }
  0x36   :  { %v50_v18 = vadd.f32 1.0, %v92_v16 }
  0x37   :  { %93 = vrcp.f32 %v49_v17 }
  0x38   :  { %95 = vrcp.f32 %v50_v18 }
  0x41   :  { %v94_v19 = vpop.eup %93 }
  0x42   :  { %v96_v20 = vpop.eup %95  ;;  %v53_v21 = vmul.f32 %v94_v19, %v41_v2 }
  0x43   :  { %v54_v22 = vmul.f32 %v96_v20, %v42_v3  ;;  %v63_v23 = vadd.f32 %v96_v20, %v94_v19 }
  0x45   :  { %v55_v24 = vadd.f32 %v54_v22, %v53_v21  ;;  %v64_v25 = vrot.slane %v63_v23, 4 }
  0x47   :  { %v56_v26 = vrot.slane %v55_v24, 4  ;;  %v65_v27 = vadd.f32 %v64_v25, %v63_v23 }
  0x49   :  { %v57_v28 = vadd.f32 %v56_v26, %v55_v24  ;;  %v66_v29 = vrot.slane %v65_v27, 2 }
  0x4b   :  { %v58_v30 = vrot.slane %v57_v28, 2  ;;  %v67_v31 = vadd.f32 %v66_v29, %v65_v27 }
  0x4d   :  { %v59_v32 = vadd.f32 %v58_v30, %v57_v28  ;;  %v68_v33 = vrot.slane %v67_v31, 1 }
  0x4f   :  { %v60_v34 = vrot.slane %v59_v32, 1  ;;  %v69_v35 = vadd.f32 %v68_v33, %v67_v31 }
  0x51   :  { %v61_v36 = vadd.f32 %v60_v34, %v59_v32  ;;  %70 = vst [vmem:[%s199_s2 + $0x1] sm:$0x1] %v69_v35 }
  0x53   :  { %62 = vst [vmem:[%s199_s2] sm:$0x1] %v61_v36 }
  0x54   :  { %83 = vsyncpa [#allocation3], 1 }
  0x55   :  { %84 = vsyncpa [#allocation5], 1 }

</bundles_post_ra>
